<compile_context>
chip_gen: v7x
topology: tpu7x:2x2x1
jax: 0.10.0
libtpu: 0.0.40
codegen_flags: <defaults>
</compile_context>

<pallas_src>
import functools

import numpy as np
import jax
import jax.numpy as jnp
from jax import lax
from jax.experimental import pallas as pl
from jax.experimental.pallas import tpu as pltpu

# ---------------- hyperparameters (small, consistent with the module) ----------------
VOCAB = 50      # hparams.vocab_size
EMB = 32        # hparams.embedding_dim
HID = 32        # hparams.hidden_dim
NCLS = 3        # hparams.num_classes
BATCH = 8
SEQLEN = 8
# bidirectional=True, num_layers=1 (so classifier in_features == 2*hidden_dim)


# ---------------- Pallas kernel ----------------
def fused_bwd_lstm_classifier_kernel(x_ref, wih_ref, whh_ref, b_ref,
                                     weff_ref, bcls_ref, out_ref,
                                     xproj_scr, h_scr, c_scr, *, seq_len):
    """Backward-direction LSTM recurrence with fused classifier epilogue.

    x_ref:    (T*B, E)  time-major flattened embedded premise tokens
    wih_ref:  (E, 4H)   packed input->hidden weights, gate order [i, f, g, o]
    whh_ref:  (H, 4H)   packed hidden->hidden weights
    b_ref:    (1, 4H)   packed combined bias (b_ih + b_hh)
    weff_ref: (H, C)    (W_cls[:, :H] + W_cls[:, H:]).T   (concat(h,h) identity)
    bcls_ref: (1, C)
    out_ref:  (B, C)    logits
    scratch:  xproj (T*B, 4H), h (B, H), c (B, H)
    """
    B, H = h_scr.shape
    T = seq_len

    # Input projection for all timesteps at once (independent of the recurrence),
    # bias folded in: (T*B, E) @ (E, 4H) -> (T*B, 4H); 4H = 128 lane-dense.
    xproj_scr[...] = (jnp.dot(x_ref[...], wih_ref[...],
                              preferred_element_type=jnp.float32)
                      + b_ref[...])

    whh = whh_ref[...]                       # hoisted out of the recurrence loop
    h_scr[...] = jnp.zeros((B, H), jnp.float32)
    c_scr[...] = jnp.zeros((B, H), jnp.float32)

    def step(t, carry):
        tt = T - 1 - t                       # backward direction
        row = pl.multiple_of(tt * B, B)
        xp = xproj_scr[pl.ds(row, B), :]     # (B, 4H) precomputed input projection
        h = h_scr[...]
        c = c_scr[...]
        # single lane-dense recurrence matmul for all four gates
        gates = xp + jnp.dot(h, whh, preferred_element_type=jnp.float32)  # (B, 4H)
        i_g = jax.nn.sigmoid(gates[:, 0 * H:1 * H])
        f_g = jax.nn.sigmoid(gates[:, 1 * H:2 * H])
        g_g = jnp.tanh(gates[:, 2 * H:3 * H])
        o_g = jax.nn.sigmoid(gates[:, 3 * H:4 * H])
        c_new = f_g * c + i_g * g_g
        h_scr[...] = o_g * jnp.tanh(c_new)
        c_scr[...] = c_new
        return carry

    lax.fori_loop(0, T, step, 0, unroll=True)

    # classifier epilogue: concat(h, h) @ W_cls.T + b == h @ (W1 + W2).T + b
    h_b = h_scr[...]
    out_ref[...] = (jnp.dot(h_b, weff_ref[...], preferred_element_type=jnp.float32)
                    + bcls_ref[...])


# ---------------- wrappers ----------------
def _pack_lstm_dir(wih, whh, b):
    """(4,E,H)/(4,H,H)/(4,1,H) per-gate params -> lane-dense (E,4H)/(H,4H)/(1,4H)."""
    E, H = wih.shape[1], wih.shape[2]
    wih_p = jnp.transpose(wih, (1, 0, 2)).reshape(E, 4 * H)
    whh_p = jnp.transpose(whh, (1, 0, 2)).reshape(H, 4 * H)
    b_p = jnp.transpose(b, (1, 0, 2)).reshape(1, 4 * H)
    return wih_p, whh_p, b_p


def baseline_forward(params, premises_seq, hypotheses_seq):
    B, T = premises_seq.shape

    # Embedding lookup: gather stays in JAX (glue); padding row 0 is zero in the table.
    p_emb = jnp.take(params["p_emb"], premises_seq, axis=0)          # (B, T, E)
    # Dropout layers are identity in eval/inference mode.
    # NOTE: the hypotheses embedding+BiLSTM and the premise FORWARD direction are
    # dead compute w.r.t. the returned logits (torch uses premises_hidden[-1], the
    # backward direction, concatenated with itself), so they are not executed.

    x2d = jnp.transpose(p_emb, (1, 0, 2)).reshape(T * B, EMB)        # time-major (T*B, E)

    wih_p, whh_p, b_p = _pack_lstm_dir(*params["p_lstm_b"])
    w_cls, b_cls = params["w_cls"], params["b_cls"]
    w_eff = jnp.transpose(w_cls[:, :HID] + w_cls[:, HID:])           # (H, C)
    b_eff = b_cls.reshape(1, NCLS)                                   # (1, C)

    vmem = pl.BlockSpec(memory_space=pltpu.MemorySpace.VMEM)
    kernel = functools.partial(fused_bwd_lstm_classifier_kernel, seq_len=T)
    logits = pl.pallas_call(
        kernel,
        out_shape=jax.ShapeDtypeStruct((B, NCLS), jnp.float32),
        in_specs=[vmem] * 6,
        out_specs=vmem,
        scratch_shapes=[pltpu.VMEM((T * B, 4 * HID), jnp.float32),   # cached x-projection
                        pltpu.VMEM((B, HID), jnp.float32),           # h
                        pltpu.VMEM((B, HID), jnp.float32)],          # c
    )(x2d, wih_p, whh_p, b_p, w_eff, b_eff)
    return logits


# ---------------- pure-JAX reference (for correctness check) ----------------
def lstm_dir_ref(x_bte, wih, whh, b, reverse):
    B, T, E = x_bte.shape
    H = whh.shape[-1]
    h = jnp.zeros((B, H), jnp.float32)
    c = jnp.zeros((B, H), jnp.float32)
    order = range(T - 1, -1, -1) if reverse else range(T)
    for t in order:
        xt = x_bte[:, t]
        gs = [xt @ wih[k] + h @ whh[k] + b[k][0] for k in range(4)]
        i = jax.nn.sigmoid(gs[0]); f = jax.nn.sigmoid(gs[1])
        g = jnp.tanh(gs[2]); o = jax.nn.sigmoid(gs[3])
        c = f * c + i * g
        h = o * jnp.tanh(c)
    return h


def baseline_forward_ref(params, premises_seq, hypotheses_seq):
    p_emb = jnp.take(params["p_emb"], premises_seq, axis=0)
    p_hb = lstm_dir_ref(p_emb, *params["p_lstm_b"], reverse=True)
    hh = jnp.concatenate([p_hb, p_hb], axis=-1)
    return hh @ params["w_cls"].T + params["b_cls"]


# ---------------- deterministic parameter init ----------------
def init_params(key):
    ks = jax.random.split(key, 16)
    s = 1.0 / np.sqrt(HID)

    def unif(k, shape):
        return jax.random.uniform(k, shape, jnp.float32, -s, s)

    def lstm_dir(k):
        k1, k2, k3, k4 = jax.random.split(k, 4)
        wih = unif(k1, (4, EMB, HID))
        whh = unif(k2, (4, HID, HID))
        b = unif(k3, (4, 1, HID)) + unif(k4, (4, 1, HID))  # b_ih + b_hh combined
        return (wih, whh, b)

    p_emb = 0.1 * jax.random.normal(ks[0], (VOCAB, EMB), jnp.float32)
    h_emb = 0.1 * jax.random.normal(ks[1], (VOCAB, EMB), jnp.float32)
    p_emb = p_emb.at[0].set(0.0)   # padding_idx=0
    h_emb = h_emb.at[0].set(0.0)

    return {
        "p_emb": p_emb,
        "h_emb": h_emb,
        "p_lstm_f": lstm_dir(ks[2]),   # present for parameter fidelity; dead w.r.t. logits
        "p_lstm_b": lstm_dir(ks[3]),
        "h_lstm_f": lstm_dir(ks[4]),   # dead w.r.t. logits
        "h_lstm_b": lstm_dir(ks[5]),   # dead w.r.t. logits
        "w_cls": unif(ks[6], (NCLS, 2 * HID)),
        "b_cls": unif(ks[7], (NCLS,)),
    }


if __name__ == "__main__":
    key = jax.random.PRNGKey(0)
    kp, kh, kparams = jax.random.split(key, 3)

    params = init_params(kparams)
    premises_seq = jax.random.randint(kp, (BATCH, SEQLEN), 0, VOCAB, dtype=jnp.int32)
    hypotheses_seq = jax.random.randint(kh, (BATCH, SEQLEN), 0, VOCAB, dtype=jnp.int32)

    logits = jax.jit(baseline_forward)(params, premises_seq, hypotheses_seq)
    logits = jax.block_until_ready(logits)

    ref = baseline_forward_ref(params, premises_seq, hypotheses_seq)
    np.testing.assert_allclose(np.asarray(logits), np.asarray(ref), rtol=1e-3, atol=1e-3)

    assert logits.shape == (BATCH, NCLS) and logits.dtype == jnp.float32
    print("KERNEL_OK")
</pallas_src>

<mosaic_0001>
module attributes {stable_mosaic.version = 11 : i64} {
  func.func @fused_bwd_lstm_classifier_kernel(%arg0: memref<64x32xf32, #tpu.memory_space<vmem>>, %arg1: memref<32x128xf32, #tpu.memory_space<vmem>>, %arg2: memref<32x128xf32, #tpu.memory_space<vmem>>, %arg3: memref<1x128xf32, #tpu.memory_space<vmem>>, %arg4: memref<32x3xf32, #tpu.memory_space<vmem>>, %arg5: memref<1x3xf32, #tpu.memory_space<vmem>>, %arg6: memref<8x3xf32, #tpu.memory_space<vmem>>, %arg7: memref<64x128xf32, #tpu.memory_space<vmem>>, %arg8: memref<8x32xf32, #tpu.memory_space<vmem>>, %arg9: memref<8x32xf32, #tpu.memory_space<vmem>>) attributes {dimension_semantics = [], scalar_prefetch = 0 : i64, scratch_operands = 3 : i64, tpu.core_type = #tpu.core_type<tc>} {
    %c0 = arith.constant 0 : index
    %c0_0 = arith.constant 0 : index
    %0 = vector.load %arg0[%c0, %c0_0] : memref<64x32xf32, #tpu.memory_space<vmem>>, vector<64x32xf32>
    %c0_1 = arith.constant 0 : index
    %c0_2 = arith.constant 0 : index
    %1 = vector.load %arg1[%c0_1, %c0_2] : memref<32x128xf32, #tpu.memory_space<vmem>>, vector<32x128xf32>
    %cst = arith.constant dense<0.000000e+00> : vector<64x128xf32>
    %2 = tpu.matmul %0, %1, %cst {dimension_numbers = #tpu.dot_dimension_numbers<[1], [0], [0], [1], [0, 0, 1, 1], [], []>} : vector<64x32xf32>, vector<32x128xf32>, vector<64x128xf32> -> vector<64x128xf32>
    %c0_3 = arith.constant 0 : index
    %c0_4 = arith.constant 0 : index
    %3 = vector.load %arg3[%c0_3, %c0_4] : memref<1x128xf32, #tpu.memory_space<vmem>>, vector<1x128xf32>
    %4 = vector.broadcast %3 : vector<1x128xf32> to vector<64x128xf32>
    %5 = arith.addf %2, %4 : vector<64x128xf32>
    %c0_5 = arith.constant 0 : index
    %c0_6 = arith.constant 0 : index
    %6 = vector.load %arg7[%c0_5, %c0_6] : memref<64x128xf32, #tpu.memory_space<vmem>>, vector<64x128xf32>
    tpu.vector_store %arg7[%c0_5, %c0_6], %5 {strides = array<i32>} : memref<64x128xf32, #tpu.memory_space<vmem>>, vector<64x128xf32>,
    %c0_7 = arith.constant 0 : index
    %c0_8 = arith.constant 0 : index
    %7 = vector.load %arg2[%c0_7, %c0_8] : memref<32x128xf32, #tpu.memory_space<vmem>>, vector<32x128xf32>
    %cst_9 = arith.constant 0.000000e+00 : f32
    %8 = vector.broadcast %cst_9 : f32 to vector<8x32xf32>
    %c0_10 = arith.constant 0 : index
    %c0_11 = arith.constant 0 : index
    %9 = vector.load %arg8[%c0_10, %c0_11] : memref<8x32xf32, #tpu.memory_space<vmem>>, vector<8x32xf32>
    tpu.vector_store %arg8[%c0_10, %c0_11], %8 {strides = array<i32>} : memref<8x32xf32, #tpu.memory_space<vmem>>, vector<8x32xf32>,
    %cst_12 = arith.constant 0.000000e+00 : f32
    %10 = vector.broadcast %cst_12 : f32 to vector<8x32xf32>
    %c0_13 = arith.constant 0 : index
    %c0_14 = arith.constant 0 : index
    %11 = vector.load %arg9[%c0_13, %c0_14] : memref<8x32xf32, #tpu.memory_space<vmem>>, vector<8x32xf32>
    tpu.vector_store %arg9[%c0_13, %c0_14], %10 {strides = array<i32>} : memref<8x32xf32, #tpu.memory_space<vmem>>, vector<8x32xf32>,
    %c0_i32 = arith.constant 0 : i32
    %c7_i32 = arith.constant 7 : i32
    %12 = arith.subi %c7_i32, %c0_i32 : i32
    %c8_i32 = arith.constant 8 : i32
    %13 = arith.muli %12, %c8_i32 : i32
    %14 = tpu.assume_multiple %13, 8 : i32
    %15 = arith.index_cast %14 : i32 to index
    %c0_15 = arith.constant 0 : index
    %16 = vector.load %arg7[%15, %c0_15] : memref<64x128xf32, #tpu.memory_space<vmem>>, vector<8x128xf32>
    %c0_16 = arith.constant 0 : index
    %c0_17 = arith.constant 0 : index
    %17 = vector.load %arg8[%c0_16, %c0_17] : memref<8x32xf32, #tpu.memory_space<vmem>>, vector<8x32xf32>
    %c0_18 = arith.constant 0 : index
    %c0_19 = arith.constant 0 : index
    %18 = vector.load %arg9[%c0_18, %c0_19] : memref<8x32xf32, #tpu.memory_space<vmem>>, vector<8x32xf32>
    %cst_20 = arith.constant dense<0.000000e+00> : vector<8x128xf32>
    %19 = tpu.matmul %17, %7, %cst_20 {dimension_numbers = #tpu.dot_dimension_numbers<[1], [0], [0], [1], [0, 0, 1, 1], [], []>} : vector<8x32xf32>, vector<32x128xf32>, vector<8x128xf32> -> vector<8x128xf32>
    %20 = arith.addf %16, %19 : vector<8x128xf32>
    %21 = vector.extract_strided_slice %20 {offsets = [0, 0], sizes = [8, 32], strides = [1, 1]} : vector<8x128xf32> to vector<8x32xf32>
    %22 = arith.negf %21 : vector<8x32xf32>
    %23 = math.exp %22 : vector<8x32xf32>
    %cst_21 = arith.constant 1.000000e+00 : f32
    %24 = vector.broadcast %cst_21 : f32 to vector<8x32xf32>
    %25 = arith.addf %24, %23 : vector<8x32xf32>
    %26 = arith.divf %24, %25 : vector<8x32xf32>
    %27 = vector.extract_strided_slice %20 {offsets = [0, 32], sizes = [8, 32], strides = [1, 1]} : vector<8x128xf32> to vector<8x32xf32>
    %28 = arith.negf %27 : vector<8x32xf32>
    %29 = math.exp %28 : vector<8x32xf32>
    %cst_22 = arith.constant 1.000000e+00 : f32
    %30 = vector.broadcast %cst_22 : f32 to vector<8x32xf32>
    %31 = arith.addf %30, %29 : vector<8x32xf32>
    %32 = arith.divf %30, %31 : vector<8x32xf32>
    %33 = vector.extract_strided_slice %20 {offsets = [0, 64], sizes = [8, 32], strides = [1, 1]} : vector<8x128xf32> to vector<8x32xf32>
    %34 = math.tanh %33 : vector<8x32xf32>
    %35 = vector.extract_strided_slice %20 {offsets = [0, 96], sizes = [8, 32], strides = [1, 1]} : vector<8x128xf32> to vector<8x32xf32>
    %36 = arith.negf %35 : vector<8x32xf32>
    %37 = math.exp %36 : vector<8x32xf32>
    %cst_23 = arith.constant 1.000000e+00 : f32
    %38 = vector.broadcast %cst_23 : f32 to vector<8x32xf32>
    %39 = arith.addf %38, %37 : vector<8x32xf32>
    %40 = arith.divf %38, %39 : vector<8x32xf32>
    %41 = arith.mulf %32, %18 : vector<8x32xf32>
    %42 = arith.mulf %26, %34 : vector<8x32xf32>
    %43 = arith.addf %41, %42 : vector<8x32xf32>
    %44 = math.tanh %43 : vector<8x32xf32>
    %45 = arith.mulf %40, %44 : vector<8x32xf32>
    %c0_24 = arith.constant 0 : index
    %c0_25 = arith.constant 0 : index
    %46 = vector.load %arg8[%c0_24, %c0_25] : memref<8x32xf32, #tpu.memory_space<vmem>>, vector<8x32xf32>
    tpu.vector_store %arg8[%c0_24, %c0_25], %45 {strides = array<i32>} : memref<8x32xf32, #tpu.memory_space<vmem>>, vector<8x32xf32>,
    %c0_26 = arith.constant 0 : index
    %c0_27 = arith.constant 0 : index
    %47 = vector.load %arg9[%c0_26, %c0_27] : memref<8x32xf32, #tpu.memory_space<vmem>>, vector<8x32xf32>
    tpu.vector_store %arg9[%c0_26, %c0_27], %43 {strides = array<i32>} : memref<8x32xf32, #tpu.memory_space<vmem>>, vector<8x32xf32>,
    %c1_i32 = arith.constant 1 : i32
    %c7_i32_28 = arith.constant 7 : i32
    %48 = arith.subi %c7_i32_28, %c1_i32 : i32
    %c8_i32_29 = arith.constant 8 : i32
    %49 = arith.muli %48, %c8_i32_29 : i32
    %50 = tpu.assume_multiple %49, 8 : i32
    %51 = arith.index_cast %50 : i32 to index
    %c0_30 = arith.constant 0 : index
    %52 = vector.load %arg7[%51, %c0_30] : memref<64x128xf32, #tpu.memory_space<vmem>>, vector<8x128xf32>
    %c0_31 = arith.constant 0 : index
    %c0_32 = arith.constant 0 : index
    %53 = vector.load %arg8[%c0_31, %c0_32] : memref<8x32xf32, #tpu.memory_space<vmem>>, vector<8x32xf32>
    %c0_33 = arith.constant 0 : index
    %c0_34 = arith.constant 0 : index
    %54 = vector.load %arg9[%c0_33, %c0_34] : memref<8x32xf32, #tpu.memory_space<vmem>>, vector<8x32xf32>
    %cst_35 = arith.constant dense<0.000000e+00> : vector<8x128xf32>
    %55 = tpu.matmul %53, %7, %cst_35 {dimension_numbers = #tpu.dot_dimension_numbers<[1], [0], [0], [1], [0, 0, 1, 1], [], []>} : vector<8x32xf32>, vector<32x128xf32>, vector<8x128xf32> -> vector<8x128xf32>
    %56 = arith.addf %52, %55 : vector<8x128xf32>
    %57 = vector.extract_strided_slice %56 {offsets = [0, 0], sizes = [8, 32], strides = [1, 1]} : vector<8x128xf32> to vector<8x32xf32>
    %58 = arith.negf %57 : vector<8x32xf32>
    %59 = math.exp %58 : vector<8x32xf32>
    %cst_36 = arith.constant 1.000000e+00 : f32
    %60 = vector.broadcast %cst_36 : f32 to vector<8x32xf32>
    %61 = arith.addf %60, %59 : vector<8x32xf32>
    %62 = arith.divf %60, %61 : vector<8x32xf32>
    %63 = vector.extract_strided_slice %56 {offsets = [0, 32], sizes = [8, 32], strides = [1, 1]} : vector<8x128xf32> to vector<8x32xf32>
    %64 = arith.negf %63 : vector<8x32xf32>
    %65 = math.exp %64 : vector<8x32xf32>
    %cst_37 = arith.constant 1.000000e+00 : f32
    %66 = vector.broadcast %cst_37 : f32 to vector<8x32xf32>
    %67 = arith.addf %66, %65 : vector<8x32xf32>
    %68 = arith.divf %66, %67 : vector<8x32xf32>
    %69 = vector.extract_strided_slice %56 {offsets = [0, 64], sizes = [8, 32], strides = [1, 1]} : vector<8x128xf32> to vector<8x32xf32>
    %70 = math.tanh %69 : vector<8x32xf32>
    %71 = vector.extract_strided_slice %56 {offsets = [0, 96], sizes = [8, 32], strides = [1, 1]} : vector<8x128xf32> to vector<8x32xf32>
    %72 = arith.negf %71 : vector<8x32xf32>
    %73 = math.exp %72 : vector<8x32xf32>
    %cst_38 = arith.constant 1.000000e+00 : f32
    %74 = vector.broadcast %cst_38 : f32 to vector<8x32xf32>
    %75 = arith.addf %74, %73 : vector<8x32xf32>
    %76 = arith.divf %74, %75 : vector<8x32xf32>
    %77 = arith.mulf %68, %54 : vector<8x32xf32>
    %78 = arith.mulf %62, %70 : vector<8x32xf32>
    %79 = arith.addf %77, %78 : vector<8x32xf32>
    %80 = math.tanh %79 : vector<8x32xf32>
    %81 = arith.mulf %76, %80 : vector<8x32xf32>
    %c0_39 = arith.constant 0 : index
    %c0_40 = arith.constant 0 : index
    %82 = vector.load %arg8[%c0_39, %c0_40] : memref<8x32xf32, #tpu.memory_space<vmem>>, vector<8x32xf32>
    tpu.vector_store %arg8[%c0_39, %c0_40], %81 {strides = array<i32>} : memref<8x32xf32, #tpu.memory_space<vmem>>, vector<8x32xf32>,
    %c0_41 = arith.constant 0 : index
    %c0_42 = arith.constant 0 : index
    %83 = vector.load %arg9[%c0_41, %c0_42] : memref<8x32xf32, #tpu.memory_space<vmem>>, vector<8x32xf32>
    tpu.vector_store %arg9[%c0_41, %c0_42], %79 {strides = array<i32>} : memref<8x32xf32, #tpu.memory_space<vmem>>, vector<8x32xf32>,
    %c2_i32 = arith.constant 2 : i32
    %c7_i32_43 = arith.constant 7 : i32
    %84 = arith.subi %c7_i32_43, %c2_i32 : i32
    %c8_i32_44 = arith.constant 8 : i32
    %85 = arith.muli %84, %c8_i32_44 : i32
    %86 = tpu.assume_multiple %85, 8 : i32
    %87 = arith.index_cast %86 : i32 to index
    %c0_45 = arith.constant 0 : index
    %88 = vector.load %arg7[%87, %c0_45] : memref<64x128xf32, #tpu.memory_space<vmem>>, vector<8x128xf32>
    %c0_46 = arith.constant 0 : index
    %c0_47 = arith.constant 0 : index
    %89 = vector.load %arg8[%c0_46, %c0_47] : memref<8x32xf32, #tpu.memory_space<vmem>>, vector<8x32xf32>
    %c0_48 = arith.constant 0 : index
    %c0_49 = arith.constant 0 : index
    %90 = vector.load %arg9[%c0_48, %c0_49] : memref<8x32xf32, #tpu.memory_space<vmem>>, vector<8x32xf32>
    %cst_50 = arith.constant dense<0.000000e+00> : vector<8x128xf32>
    %91 = tpu.matmul %89, %7, %cst_50 {dimension_numbers = #tpu.dot_dimension_numbers<[1], [0], [0], [1], [0, 0, 1, 1], [], []>} : vector<8x32xf32>, vector<32x128xf32>, vector<8x128xf32> -> vector<8x128xf32>
    %92 = arith.addf %88, %91 : vector<8x128xf32>
    %93 = vector.extract_strided_slice %92 {offsets = [0, 0], sizes = [8, 32], strides = [1, 1]} : vector<8x128xf32> to vector<8x32xf32>
    %94 = arith.negf %93 : vector<8x32xf32>
    %95 = math.exp %94 : vector<8x32xf32>
    %cst_51 = arith.constant 1.000000e+00 : f32
    %96 = vector.broadcast %cst_51 : f32 to vector<8x32xf32>
    %97 = arith.addf %96, %95 : vector<8x32xf32>
    %98 = arith.divf %96, %97 : vector<8x32xf32>
    %99 = vector.extract_strided_slice %92 {offsets = [0, 32], sizes = [8, 32], strides = [1, 1]} : vector<8x128xf32> to vector<8x32xf32>
    %100 = arith.negf %99 : vector<8x32xf32>
    %101 = math.exp %100 : vector<8x32xf32>
    %cst_52 = arith.constant 1.000000e+00 : f32
    %102 = vector.broadcast %cst_52 : f32 to vector<8x32xf32>
    %103 = arith.addf %102, %101 : vector<8x32xf32>
    %104 = arith.divf %102, %103 : vector<8x32xf32>
    %105 = vector.extract_strided_slice %92 {offsets = [0, 64], sizes = [8, 32], strides = [1, 1]} : vector<8x128xf32> to vector<8x32xf32>
    %106 = math.tanh %105 : vector<8x32xf32>
    %107 = vector.extract_strided_slice %92 {offsets = [0, 96], sizes = [8, 32], strides = [1, 1]} : vector<8x128xf32> to vector<8x32xf32>
    %108 = arith.negf %107 : vector<8x32xf32>
    %109 = math.exp %108 : vector<8x32xf32>
    %cst_53 = arith.constant 1.000000e+00 : f32
    %110 = vector.broadcast %cst_53 : f32 to vector<8x32xf32>
    %111 = arith.addf %110, %109 : vector<8x32xf32>
    %112 = arith.divf %110, %111 : vector<8x32xf32>
    %113 = arith.mulf %104, %90 : vector<8x32xf32>
    %114 = arith.mulf %98, %106 : vector<8x32xf32>
    %115 = arith.addf %113, %114 : vector<8x32xf32>
    %116 = math.tanh %115 : vector<8x32xf32>
    %117 = arith.mulf %112, %116 : vector<8x32xf32>
    %c0_54 = arith.constant 0 : index
    %c0_55 = arith.constant 0 : index
    %118 = vector.load %arg8[%c0_54, %c0_55] : memref<8x32xf32, #tpu.memory_space<vmem>>, vector<8x32xf32>
    tpu.vector_store %arg8[%c0_54, %c0_55], %117 {strides = array<i32>} : memref<8x32xf32, #tpu.memory_space<vmem>>, vector<8x32xf32>,
    %c0_56 = arith.constant 0 : index
    %c0_57 = arith.constant 0 : index
    %119 = vector.load %arg9[%c0_56, %c0_57] : memref<8x32xf32, #tpu.memory_space<vmem>>, vector<8x32xf32>
    tpu.vector_store %arg9[%c0_56, %c0_57], %115 {strides = array<i32>} : memref<8x32xf32, #tpu.memory_space<vmem>>, vector<8x32xf32>,
    %c3_i32 = arith.constant 3 : i32
    %c7_i32_58 = arith.constant 7 : i32
    %120 = arith.subi %c7_i32_58, %c3_i32 : i32
    %c8_i32_59 = arith.constant 8 : i32
    %121 = arith.muli %120, %c8_i32_59 : i32
    %122 = tpu.assume_multiple %121, 8 : i32
    %123 = arith.index_cast %122 : i32 to index
    %c0_60 = arith.constant 0 : index
    %124 = vector.load %arg7[%123, %c0_60] : memref<64x128xf32, #tpu.memory_space<vmem>>, vector<8x128xf32>
    %c0_61 = arith.constant 0 : index
    %c0_62 = arith.constant 0 : index
    %125 = vector.load %arg8[%c0_61, %c0_62] : memref<8x32xf32, #tpu.memory_space<vmem>>, vector<8x32xf32>
    %c0_63 = arith.constant 0 : index
    %c0_64 = arith.constant 0 : index
    %126 = vector.load %arg9[%c0_63, %c0_64] : memref<8x32xf32, #tpu.memory_space<vmem>>, vector<8x32xf32>
    %cst_65 = arith.constant dense<0.000000e+00> : vector<8x128xf32>
    %127 = tpu.matmul %125, %7, %cst_65 {dimension_numbers = #tpu.dot_dimension_numbers<[1], [0], [0], [1], [0, 0, 1, 1], [], []>} : vector<8x32xf32>, vector<32x128xf32>, vector<8x128xf32> -> vector<8x128xf32>
    %128 = arith.addf %124, %127 : vector<8x128xf32>
    %129 = vector.extract_strided_slice %128 {offsets = [0, 0], sizes = [8, 32], strides = [1, 1]} : vector<8x128xf32> to vector<8x32xf32>
    %130 = arith.negf %129 : vector<8x32xf32>
    %131 = math.exp %130 : vector<8x32xf32>
    %cst_66 = arith.constant 1.000000e+00 : f32
    %132 = vector.broadcast %cst_66 : f32 to vector<8x32xf32>
    %133 = arith.addf %132, %131 : vector<8x32xf32>
    %134 = arith.divf %132, %133 : vector<8x32xf32>
    %135 = vector.extract_strided_slice %128 {offsets = [0, 32], sizes = [8, 32], strides = [1, 1]} : vector<8x128xf32> to vector<8x32xf32>
    %136 = arith.negf %135 : vector<8x32xf32>
    %137 = math.exp %136 : vector<8x32xf32>
    %cst_67 = arith.constant 1.000000e+00 : f32
    %138 = vector.broadcast %cst_67 : f32 to vector<8x32xf32>
    %139 = arith.addf %138, %137 : vector<8x32xf32>
    %140 = arith.divf %138, %139 : vector<8x32xf32>
    %141 = vector.extract_strided_slice %128 {offsets = [0, 64], sizes = [8, 32], strides = [1, 1]} : vector<8x128xf32> to vector<8x32xf32>
    %142 = math.tanh %141 : vector<8x32xf32>
    %143 = vector.extract_strided_slice %128 {offsets = [0, 96], sizes = [8, 32], strides = [1, 1]} : vector<8x128xf32> to vector<8x32xf32>
    %144 = arith.negf %143 : vector<8x32xf32>
    %145 = math.exp %144 : vector<8x32xf32>
    %cst_68 = arith.constant 1.000000e+00 : f32
    %146 = vector.broadcast %cst_68 : f32 to vector<8x32xf32>
    %147 = arith.addf %146, %145 : vector<8x32xf32>
    %148 = arith.divf %146, %147 : vector<8x32xf32>
    %149 = arith.mulf %140, %126 : vector<8x32xf32>
    %150 = arith.mulf %134, %142 : vector<8x32xf32>
    %151 = arith.addf %149, %150 : vector<8x32xf32>
    %152 = math.tanh %151 : vector<8x32xf32>
    %153 = arith.mulf %148, %152 : vector<8x32xf32>
    %c0_69 = arith.constant 0 : index
    %c0_70 = arith.constant 0 : index
    %154 = vector.load %arg8[%c0_69, %c0_70] : memref<8x32xf32, #tpu.memory_space<vmem>>, vector<8x32xf32>
    tpu.vector_store %arg8[%c0_69, %c0_70], %153 {strides = array<i32>} : memref<8x32xf32, #tpu.memory_space<vmem>>, vector<8x32xf32>,
    %c0_71 = arith.constant 0 : index
    %c0_72 = arith.constant 0 : index
    %155 = vector.load %arg9[%c0_71, %c0_72] : memref<8x32xf32, #tpu.memory_space<vmem>>, vector<8x32xf32>
    tpu.vector_store %arg9[%c0_71, %c0_72], %151 {strides = array<i32>} : memref<8x32xf32, #tpu.memory_space<vmem>>, vector<8x32xf32>,
    %c4_i32 = arith.constant 4 : i32
    %c7_i32_73 = arith.constant 7 : i32
    %156 = arith.subi %c7_i32_73, %c4_i32 : i32
    %c8_i32_74 = arith.constant 8 : i32
    %157 = arith.muli %156, %c8_i32_74 : i32
    %158 = tpu.assume_multiple %157, 8 : i32
    %159 = arith.index_cast %158 : i32 to index
    %c0_75 = arith.constant 0 : index
    %160 = vector.load %arg7[%159, %c0_75] : memref<64x128xf32, #tpu.memory_space<vmem>>, vector<8x128xf32>
    %c0_76 = arith.constant 0 : index
    %c0_77 = arith.constant 0 : index
    %161 = vector.load %arg8[%c0_76, %c0_77] : memref<8x32xf32, #tpu.memory_space<vmem>>, vector<8x32xf32>
    %c0_78 = arith.constant 0 : index
    %c0_79 = arith.constant 0 : index
    %162 = vector.load %arg9[%c0_78, %c0_79] : memref<8x32xf32, #tpu.memory_space<vmem>>, vector<8x32xf32>
    %cst_80 = arith.constant dense<0.000000e+00> : vector<8x128xf32>
    %163 = tpu.matmul %161, %7, %cst_80 {dimension_numbers = #tpu.dot_dimension_numbers<[1], [0], [0], [1], [0, 0, 1, 1], [], []>} : vector<8x32xf32>, vector<32x128xf32>, vector<8x128xf32> -> vector<8x128xf32>
    %164 = arith.addf %160, %163 : vector<8x128xf32>
    %165 = vector.extract_strided_slice %164 {offsets = [0, 0], sizes = [8, 32], strides = [1, 1]} : vector<8x128xf32> to vector<8x32xf32>
    %166 = arith.negf %165 : vector<8x32xf32>
    %167 = math.exp %166 : vector<8x32xf32>
    %cst_81 = arith.constant 1.000000e+00 : f32
    %168 = vector.broadcast %cst_81 : f32 to vector<8x32xf32>
    %169 = arith.addf %168, %167 : vector<8x32xf32>
    %170 = arith.divf %168, %169 : vector<8x32xf32>
    %171 = vector.extract_strided_slice %164 {offsets = [0, 32], sizes = [8, 32], strides = [1, 1]} : vector<8x128xf32> to vector<8x32xf32>
    %172 = arith.negf %171 : vector<8x32xf32>
    %173 = math.exp %172 : vector<8x32xf32>
    %cst_82 = arith.constant 1.000000e+00 : f32
    %174 = vector.broadcast %cst_82 : f32 to vector<8x32xf32>
    %175 = arith.addf %174, %173 : vector<8x32xf32>
    %176 = arith.divf %174, %175 : vector<8x32xf32>
    %177 = vector.extract_strided_slice %164 {offsets = [0, 64], sizes = [8, 32], strides = [1, 1]} : vector<8x128xf32> to vector<8x32xf32>
    %178 = math.tanh %177 : vector<8x32xf32>
    %179 = vector.extract_strided_slice %164 {offsets = [0, 96], sizes = [8, 32], strides = [1, 1]} : vector<8x128xf32> to vector<8x32xf32>
    %180 = arith.negf %179 : vector<8x32xf32>
    %181 = math.exp %180 : vector<8x32xf32>
    %cst_83 = arith.constant 1.000000e+00 : f32
    %182 = vector.broadcast %cst_83 : f32 to vector<8x32xf32>
    %183 = arith.addf %182, %181 : vector<8x32xf32>
    %184 = arith.divf %182, %183 : vector<8x32xf32>
    %185 = arith.mulf %176, %162 : vector<8x32xf32>
    %186 = arith.mulf %170, %178 : vector<8x32xf32>
    %187 = arith.addf %185, %186 : vector<8x32xf32>
    %188 = math.tanh %187 : vector<8x32xf32>
    %189 = arith.mulf %184, %188 : vector<8x32xf32>
    %c0_84 = arith.constant 0 : index
    %c0_85 = arith.constant 0 : index
    %190 = vector.load %arg8[%c0_84, %c0_85] : memref<8x32xf32, #tpu.memory_space<vmem>>, vector<8x32xf32>
    tpu.vector_store %arg8[%c0_84, %c0_85], %189 {strides = array<i32>} : memref<8x32xf32, #tpu.memory_space<vmem>>, vector<8x32xf32>,
    %c0_86 = arith.constant 0 : index
    %c0_87 = arith.constant 0 : index
    %191 = vector.load %arg9[%c0_86, %c0_87] : memref<8x32xf32, #tpu.memory_space<vmem>>, vector<8x32xf32>
    tpu.vector_store %arg9[%c0_86, %c0_87], %187 {strides = array<i32>} : memref<8x32xf32, #tpu.memory_space<vmem>>, vector<8x32xf32>,
    %c5_i32 = arith.constant 5 : i32
    %c7_i32_88 = arith.constant 7 : i32
    %192 = arith.subi %c7_i32_88, %c5_i32 : i32
    %c8_i32_89 = arith.constant 8 : i32
    %193 = arith.muli %192, %c8_i32_89 : i32
    %194 = tpu.assume_multiple %193, 8 : i32
    %195 = arith.index_cast %194 : i32 to index
    %c0_90 = arith.constant 0 : index
    %196 = vector.load %arg7[%195, %c0_90] : memref<64x128xf32, #tpu.memory_space<vmem>>, vector<8x128xf32>
    %c0_91 = arith.constant 0 : index
    %c0_92 = arith.constant 0 : index
    %197 = vector.load %arg8[%c0_91, %c0_92] : memref<8x32xf32, #tpu.memory_space<vmem>>, vector<8x32xf32>
    %c0_93 = arith.constant 0 : index
    %c0_94 = arith.constant 0 : index
    %198 = vector.load %arg9[%c0_93, %c0_94] : memref<8x32xf32, #tpu.memory_space<vmem>>, vector<8x32xf32>
    %cst_95 = arith.constant dense<0.000000e+00> : vector<8x128xf32>
    %199 = tpu.matmul %197, %7, %cst_95 {dimension_numbers = #tpu.dot_dimension_numbers<[1], [0], [0], [1], [0, 0, 1, 1], [], []>} : vector<8x32xf32>, vector<32x128xf32>, vector<8x128xf32> -> vector<8x128xf32>
    %200 = arith.addf %196, %199 : vector<8x128xf32>
    %201 = vector.extract_strided_slice %200 {offsets = [0, 0], sizes = [8, 32], strides = [1, 1]} : vector<8x128xf32> to vector<8x32xf32>
    %202 = arith.negf %201 : vector<8x32xf32>
    %203 = math.exp %202 : vector<8x32xf32>
    %cst_96 = arith.constant 1.000000e+00 : f32
    %204 = vector.broadcast %cst_96 : f32 to vector<8x32xf32>
    %205 = arith.addf %204, %203 : vector<8x32xf32>
    %206 = arith.divf %204, %205 : vector<8x32xf32>
    %207 = vector.extract_strided_slice %200 {offsets = [0, 32], sizes = [8, 32], strides = [1, 1]} : vector<8x128xf32> to vector<8x32xf32>
    %208 = arith.negf %207 : vector<8x32xf32>
    %209 = math.exp %208 : vector<8x32xf32>
    %cst_97 = arith.constant 1.000000e+00 : f32
    %210 = vector.broadcast %cst_97 : f32 to vector<8x32xf32>
    %211 = arith.addf %210, %209 : vector<8x32xf32>
    %212 = arith.divf %210, %211 : vector<8x32xf32>
    %213 = vector.extract_strided_slice %200 {offsets = [0, 64], sizes = [8, 32], strides = [1, 1]} : vector<8x128xf32> to vector<8x32xf32>
    %214 = math.tanh %213 : vector<8x32xf32>
    %215 = vector.extract_strided_slice %200 {offsets = [0, 96], sizes = [8, 32], strides = [1, 1]} : vector<8x128xf32> to vector<8x32xf32>
    %216 = arith.negf %215 : vector<8x32xf32>
    %217 = math.exp %216 : vector<8x32xf32>
    %cst_98 = arith.constant 1.000000e+00 : f32
    %218 = vector.broadcast %cst_98 : f32 to vector<8x32xf32>
    %219 = arith.addf %218, %217 : vector<8x32xf32>
    %220 = arith.divf %218, %219 : vector<8x32xf32>
    %221 = arith.mulf %212, %198 : vector<8x32xf32>
    %222 = arith.mulf %206, %214 : vector<8x32xf32>
    %223 = arith.addf %221, %222 : vector<8x32xf32>
    %224 = math.tanh %223 : vector<8x32xf32>
    %225 = arith.mulf %220, %224 : vector<8x32xf32>
    %c0_99 = arith.constant 0 : index
    %c0_100 = arith.constant 0 : index
    %226 = vector.load %arg8[%c0_99, %c0_100] : memref<8x32xf32, #tpu.memory_space<vmem>>, vector<8x32xf32>
    tpu.vector_store %arg8[%c0_99, %c0_100], %225 {strides = array<i32>} : memref<8x32xf32, #tpu.memory_space<vmem>>, vector<8x32xf32>,
    %c0_101 = arith.constant 0 : index
    %c0_102 = arith.constant 0 : index
    %227 = vector.load %arg9[%c0_101, %c0_102] : memref<8x32xf32, #tpu.memory_space<vmem>>, vector<8x32xf32>
    tpu.vector_store %arg9[%c0_101, %c0_102], %223 {strides = array<i32>} : memref<8x32xf32, #tpu.memory_space<vmem>>, vector<8x32xf32>,
    %c6_i32 = arith.constant 6 : i32
    %c7_i32_103 = arith.constant 7 : i32
    %228 = arith.subi %c7_i32_103, %c6_i32 : i32
    %c8_i32_104 = arith.constant 8 : i32
    %229 = arith.muli %228, %c8_i32_104 : i32
    %230 = tpu.assume_multiple %229, 8 : i32
    %231 = arith.index_cast %230 : i32 to index
    %c0_105 = arith.constant 0 : index
    %232 = vector.load %arg7[%231, %c0_105] : memref<64x128xf32, #tpu.memory_space<vmem>>, vector<8x128xf32>
    %c0_106 = arith.constant 0 : index
    %c0_107 = arith.constant 0 : index
    %233 = vector.load %arg8[%c0_106, %c0_107] : memref<8x32xf32, #tpu.memory_space<vmem>>, vector<8x32xf32>
    %c0_108 = arith.constant 0 : index
    %c0_109 = arith.constant 0 : index
    %234 = vector.load %arg9[%c0_108, %c0_109] : memref<8x32xf32, #tpu.memory_space<vmem>>, vector<8x32xf32>
    %cst_110 = arith.constant dense<0.000000e+00> : vector<8x128xf32>
    %235 = tpu.matmul %233, %7, %cst_110 {dimension_numbers = #tpu.dot_dimension_numbers<[1], [0], [0], [1], [0, 0, 1, 1], [], []>} : vector<8x32xf32>, vector<32x128xf32>, vector<8x128xf32> -> vector<8x128xf32>
    %236 = arith.addf %232, %235 : vector<8x128xf32>
    %237 = vector.extract_strided_slice %236 {offsets = [0, 0], sizes = [8, 32], strides = [1, 1]} : vector<8x128xf32> to vector<8x32xf32>
    %238 = arith.negf %237 : vector<8x32xf32>
    %239 = math.exp %238 : vector<8x32xf32>
    %cst_111 = arith.constant 1.000000e+00 : f32
    %240 = vector.broadcast %cst_111 : f32 to vector<8x32xf32>
    %241 = arith.addf %240, %239 : vector<8x32xf32>
    %242 = arith.divf %240, %241 : vector<8x32xf32>
    %243 = vector.extract_strided_slice %236 {offsets = [0, 32], sizes = [8, 32], strides = [1, 1]} : vector<8x128xf32> to vector<8x32xf32>
    %244 = arith.negf %243 : vector<8x32xf32>
    %245 = math.exp %244 : vector<8x32xf32>
    %cst_112 = arith.constant 1.000000e+00 : f32
    %246 = vector.broadcast %cst_112 : f32 to vector<8x32xf32>
    %247 = arith.addf %246, %245 : vector<8x32xf32>
    %248 = arith.divf %246, %247 : vector<8x32xf32>
    %249 = vector.extract_strided_slice %236 {offsets = [0, 64], sizes = [8, 32], strides = [1, 1]} : vector<8x128xf32> to vector<8x32xf32>
    %250 = math.tanh %249 : vector<8x32xf32>
    %251 = vector.extract_strided_slice %236 {offsets = [0, 96], sizes = [8, 32], strides = [1, 1]} : vector<8x128xf32> to vector<8x32xf32>
    %252 = arith.negf %251 : vector<8x32xf32>
    %253 = math.exp %252 : vector<8x32xf32>
    %cst_113 = arith.constant 1.000000e+00 : f32
    %254 = vector.broadcast %cst_113 : f32 to vector<8x32xf32>
    %255 = arith.addf %254, %253 : vector<8x32xf32>
    %256 = arith.divf %254, %255 : vector<8x32xf32>
    %257 = arith.mulf %248, %234 : vector<8x32xf32>
    %258 = arith.mulf %242, %250 : vector<8x32xf32>
    %259 = arith.addf %257, %258 : vector<8x32xf32>
    %260 = math.tanh %259 : vector<8x32xf32>
    %261 = arith.mulf %256, %260 : vector<8x32xf32>
    %c0_114 = arith.constant 0 : index
    %c0_115 = arith.constant 0 : index
    %262 = vector.load %arg8[%c0_114, %c0_115] : memref<8x32xf32, #tpu.memory_space<vmem>>, vector<8x32xf32>
    tpu.vector_store %arg8[%c0_114, %c0_115], %261 {strides = array<i32>} : memref<8x32xf32, #tpu.memory_space<vmem>>, vector<8x32xf32>,
    %c0_116 = arith.constant 0 : index
    %c0_117 = arith.constant 0 : index
    %263 = vector.load %arg9[%c0_116, %c0_117] : memref<8x32xf32, #tpu.memory_space<vmem>>, vector<8x32xf32>
    tpu.vector_store %arg9[%c0_116, %c0_117], %259 {strides = array<i32>} : memref<8x32xf32, #tpu.memory_space<vmem>>, vector<8x32xf32>,
    %c7_i32_118 = arith.constant 7 : i32
    %c7_i32_119 = arith.constant 7 : i32
    %264 = arith.subi %c7_i32_119, %c7_i32_118 : i32
    %c8_i32_120 = arith.constant 8 : i32
    %265 = arith.muli %264, %c8_i32_120 : i32
    %266 = tpu.assume_multiple %265, 8 : i32
    %267 = arith.index_cast %266 : i32 to index
    %c0_121 = arith.constant 0 : index
    %268 = vector.load %arg7[%267, %c0_121] : memref<64x128xf32, #tpu.memory_space<vmem>>, vector<8x128xf32>
    %c0_122 = arith.constant 0 : index
    %c0_123 = arith.constant 0 : index
    %269 = vector.load %arg8[%c0_122, %c0_123] : memref<8x32xf32, #tpu.memory_space<vmem>>, vector<8x32xf32>
    %c0_124 = arith.constant 0 : index
    %c0_125 = arith.constant 0 : index
    %270 = vector.load %arg9[%c0_124, %c0_125] : memref<8x32xf32, #tpu.memory_space<vmem>>, vector<8x32xf32>
    %cst_126 = arith.constant dense<0.000000e+00> : vector<8x128xf32>
    %271 = tpu.matmul %269, %7, %cst_126 {dimension_numbers = #tpu.dot_dimension_numbers<[1], [0], [0], [1], [0, 0, 1, 1], [], []>} : vector<8x32xf32>, vector<32x128xf32>, vector<8x128xf32> -> vector<8x128xf32>
    %272 = arith.addf %268, %271 : vector<8x128xf32>
    %273 = vector.extract_strided_slice %272 {offsets = [0, 0], sizes = [8, 32], strides = [1, 1]} : vector<8x128xf32> to vector<8x32xf32>
    %274 = arith.negf %273 : vector<8x32xf32>
    %275 = math.exp %274 : vector<8x32xf32>
    %cst_127 = arith.constant 1.000000e+00 : f32
    %276 = vector.broadcast %cst_127 : f32 to vector<8x32xf32>
    %277 = arith.addf %276, %275 : vector<8x32xf32>
    %278 = arith.divf %276, %277 : vector<8x32xf32>
    %279 = vector.extract_strided_slice %272 {offsets = [0, 32], sizes = [8, 32], strides = [1, 1]} : vector<8x128xf32> to vector<8x32xf32>
    %280 = arith.negf %279 : vector<8x32xf32>
    %281 = math.exp %280 : vector<8x32xf32>
    %cst_128 = arith.constant 1.000000e+00 : f32
    %282 = vector.broadcast %cst_128 : f32 to vector<8x32xf32>
    %283 = arith.addf %282, %281 : vector<8x32xf32>
    %284 = arith.divf %282, %283 : vector<8x32xf32>
    %285 = vector.extract_strided_slice %272 {offsets = [0, 64], sizes = [8, 32], strides = [1, 1]} : vector<8x128xf32> to vector<8x32xf32>
    %286 = math.tanh %285 : vector<8x32xf32>
    %287 = vector.extract_strided_slice %272 {offsets = [0, 96], sizes = [8, 32], strides = [1, 1]} : vector<8x128xf32> to vector<8x32xf32>
    %288 = arith.negf %287 : vector<8x32xf32>
    %289 = math.exp %288 : vector<8x32xf32>
    %cst_129 = arith.constant 1.000000e+00 : f32
    %290 = vector.broadcast %cst_129 : f32 to vector<8x32xf32>
    %291 = arith.addf %290, %289 : vector<8x32xf32>
    %292 = arith.divf %290, %291 : vector<8x32xf32>
    %293 = arith.mulf %284, %270 : vector<8x32xf32>
    %294 = arith.mulf %278, %286 : vector<8x32xf32>
    %295 = arith.addf %293, %294 : vector<8x32xf32>
    %296 = math.tanh %295 : vector<8x32xf32>
    %297 = arith.mulf %292, %296 : vector<8x32xf32>
    %c0_130 = arith.constant 0 : index
    %c0_131 = arith.constant 0 : index
    %298 = vector.load %arg8[%c0_130, %c0_131] : memref<8x32xf32, #tpu.memory_space<vmem>>, vector<8x32xf32>
    tpu.vector_store %arg8[%c0_130, %c0_131], %297 {strides = array<i32>} : memref<8x32xf32, #tpu.memory_space<vmem>>, vector<8x32xf32>,
    %c0_132 = arith.constant 0 : index
    %c0_133 = arith.constant 0 : index
    %299 = vector.load %arg9[%c0_132, %c0_133] : memref<8x32xf32, #tpu.memory_space<vmem>>, vector<8x32xf32>
    tpu.vector_store %arg9[%c0_132, %c0_133], %295 {strides = array<i32>} : memref<8x32xf32, #tpu.memory_space<vmem>>, vector<8x32xf32>,
    %c8_i32_134 = arith.constant 8 : i32
    %c0_135 = arith.constant 0 : index
    %c0_136 = arith.constant 0 : index
    %300 = vector.load %arg8[%c0_135, %c0_136] : memref<8x32xf32, #tpu.memory_space<vmem>>, vector<8x32xf32>
    %c0_137 = arith.constant 0 : index
    %c0_138 = arith.constant 0 : index
    %301 = vector.load %arg4[%c0_137, %c0_138] : memref<32x3xf32, #tpu.memory_space<vmem>>, vector<32x3xf32>
    %cst_139 = arith.constant dense<0.000000e+00> : vector<8x3xf32>
    %302 = tpu.matmul %300, %301, %cst_139 {dimension_numbers = #tpu.dot_dimension_numbers<[1], [0], [0], [1], [0, 0, 1, 1], [], []>} : vector<8x32xf32>, vector<32x3xf32>, vector<8x3xf32> -> vector<8x3xf32>
    %c0_140 = arith.constant 0 : index
    %c0_141 = arith.constant 0 : index
    %303 = vector.load %arg5[%c0_140, %c0_141] : memref<1x3xf32, #tpu.memory_space<vmem>>, vector<1x3xf32>
    %304 = vector.broadcast %303 : vector<1x3xf32> to vector<8x3xf32>
    %305 = arith.addf %302, %304 : vector<8x3xf32>
    %c0_142 = arith.constant 0 : index
    %c0_143 = arith.constant 0 : index
    %306 = vector.load %arg6[%c0_142, %c0_143] : memref<8x3xf32, #tpu.memory_space<vmem>>, vector<8x3xf32>
    tpu.vector_store %arg6[%c0_142, %c0_143], %305 {strides = array<i32>} : memref<8x3xf32, #tpu.memory_space<vmem>>, vector<8x3xf32>,
    return
  }
}

</mosaic_0001>

<bundles_post_ra>
// kernel: baseline_forward.1
= control target key start
LH: loop header
LB: loop body
LE: loop exit
PB: predicated region body
PF: predicated region fallthrough
CT: control target
= control target key end

     0   :  { %vm42_vm0 = vcmask 261120   ;;  %v1539_v3 = vmov 0.0|0.0   ;;  %vm1540_vm1 = vmmov 0   ;;  %v1541_v4 = vmov 0.0   ;;  %s1544_s29 = smov 96   ;;  %s1808_s1 = inlined_call_operand.vmem [shape: f32[32,128], index: 1, kind: input, shape index: {}]   ;;  %s1809_s0 = inlined_call_operand.vmem [shape: f32[64,32], index: 0, kind: input, shape index: {}]   ;;  %s1810_s2 = inlined_call_operand.vmem [shape: f32[32,128], index: 2, kind: input, shape index: {}]   ;;  %s1811_s3 = inlined_call_operand.vmem [shape: f32[1,128], index: 3, kind: input, shape index: {}]   ;;  %s1812_s4 = inlined_call_operand.vmem [shape: f32[32,3], index: 4, kind: input, shape index: {}]   ;;  %s1813_s5 = inlined_call_operand.vmem [shape: f32[1,3], index: 5, kind: input, shape index: {}]   ;;  %s1814_s6 = inlined_call_operand.vmem [shape: f32[8,3], index: 6, kind: output, shape index: {}]  }
   0x1   :  { %v31_v0 = vld [vmem:[%s1808_s1] sm:$0xff]  ;;  %v32_v1 = vld [vmem:[%s1808_s1 + $0x8] sm:$0xff]  ;;  %v33_v2 = vld [vmem:[%s1808_s1 + $0x10] sm:$0xff]  ;;  %1415 = vmatprep.subr.bf16.mxu1 %v1539_v3  ;;  %1316 = vmatprep.mubr.msk.f32.mxu1 %vm1540_vm1, %v1541_v4  ;;  %184 = vst.msk [vmem:[#allocation3] sm:$0xff] %vm42_vm0, %v1541_v4  ;;  %vm1198_vm2 = vcmask 23552  }
   0x2   :  { %185 = vst.msk [vmem:[#allocation4] sm:$0xff] %vm42_vm0, %v1541_v4  ;;  %v1407_v5 = vpack.c.bf16 %v32_v1, %v31_v0  ;;  %v34_v6 = vld [vmem:[%s1808_s1 + $0x18] sm:$0xff]  ;;  %v23_v7 = vld [vmem:[%s1809_s0] sm:$0xff]  ;;  %v181_v10 = vld [vmem:[%s1810_s2 + $0x8] sm:$0xff] }
   0x3   :  { %v1411_v8 = vpack.c.bf16 %v34_v6, %v33_v2  ;;  %1296 = vmatprep.mubr.msk.f32.mxu0 %vm42_vm0, %v23_v7  ;;  %v180_v9 = vld [vmem:[%s1810_s2] sm:$0xff]  ;;  %v182_v12 = vld [vmem:[%s1810_s2 + $0x10] sm:$0xff]  ;;  %v183_v13 = vld [vmem:[%s1810_s2 + $0x18] sm:$0xff] }
   0x4   :  { %1408 = vmatprep.subr.bf16.mxu0 %v1407_v5  ;;  %v1609_v11 = vpack.c.bf16 %v181_v10, %v180_v9  ;;  %v1618_v14 = vpack.c.bf16 %v183_v13, %v182_v12  ;;  %v24_v15 = vld [vmem:[%s1809_s0 + $0x8] sm:$0xff]  ;;  %v25_v16 = vld [vmem:[%s1809_s0 + $0x10] sm:$0xff]  ;;  %v26_v18 = vld [vmem:[%s1809_s0 + $0x18] sm:$0xff] }
   0x5   :  { %1410 = vmatpush3.bf16.msra.mxu0 %v1407_v5  ;;  %v27_v19 = vld [vmem:[%s1809_s0 + $0x20] sm:$0xff]  ;;  %v28_v20 = vld [vmem:[%s1809_s0 + $0x28] sm:$0xff]  ;;  %v29_v21 = vld [vmem:[%s1809_s0 + $0x30] sm:$0xff] }
   0x6   :  { %1412 = vmatprep.subr.bf16.mxu0 %v1411_v8  ;;  %1417 = vmatpush3.bf16.msra.mxu1 %v1609_v11  ;;  %v30_v22 = vld [vmem:[%s1809_s0 + $0x38] sm:$0xff]  ;;  %v1204_v23 = vld [vmem:[%s1811_s3] ss:$0 sm:$0xff]  ;;  %s1542_s0 = smov 64   ;;  %s1543_s3 = smov 32  }
   0x7   :  { %1418 = vmatprep.subr.bf16.mxu1 %v1539_v3 }
   0x8   :  { %v188_v17 = vld [vmem:[#allocation3] sm:$0xff] }
   0x9   :  { %1414 = vmatpush3.bf16.msra.mxu0 %v1411_v8  ;;  %v189_v44 = vld [vmem:[#allocation4] sm:$0xff] }
   0xa   :  { %1427 = vmatprep.subr.bf16.mxu0 %v1539_v3  ;;  %1420 = vmatpush3.bf16.msra.mxu1 %v1618_v14 }
   0xb   :  { %1421 = vmatprep.subr.bf16.mxu1 %v1539_v3 }
   0xc   :  { %1297 = vmatmul.mubr.msk.f32.vlgmr.msra.gmra.mrb[0].mxu0 %vm42_vm0, %v24_v15 }
   0xd   :  { %1299 = vmatprep.mubr.msk.f32.mxu0 %vm42_vm0, %v25_v16  ;;  %1429 = vmatpush3.bf16.msra.mxu0 %v1609_v11 }
   0xe   :  { %1317 = vmatmul.mubr.msk.f32.vlgmr.msra.gmra.mrb[0].mxu1 %vm42_vm0, %v188_v17  ;;  %1430 = vmatprep.subr.bf16.mxu0 %v1539_v3 }
   0xf   :  { %1423 = vmatpush3.bf16.msra.mxu1 %v1609_v11  ;;  %1327 = vmatprep.mubr.msk.f32.mxu1 %vm1540_vm1, %v1541_v4 }
  0x10   :  { %1300 = vmatmul.mubr.msk.f32.gmra.mrb[2].mxu0 %vm42_vm0, %v26_v18  ;;  %1424 = vmatprep.subr.bf16.mxu1 %v1539_v3 }
  0x11   :  { %1302 = vmatprep.mubr.msk.f32.mxu0 %vm42_vm0, %v27_v19  ;;  %1432 = vmatpush3.bf16.msra.mxu0 %v1618_v14 }
  0x12   :  { %1439 = vmatprep.subr.bf16.mxu0 %v1539_v3 }
  0x13   :  { %1426 = vmatpush3.bf16.msra.mxu1 %v1618_v14 }
  0x14   :  { %1303 = vmatmul.mubr.msk.f32.gmra.mrb[4].mxu0 %vm42_vm0, %v28_v20  ;;  %1433 = vmatprep.subr.bf16.mxu1 %v1539_v3 }
  0x15   :  { %1305 = vmatprep.mubr.msk.f32.mxu0 %vm42_vm0, %v29_v21 }
  0x18   :  { %1306 = vmatmul.mubr.msk.f32.gmra.mrb[6].mxu0 %vm42_vm0, %v30_v22 }
  0x19   :  { %1338 = vmatprep.mubr.msk.f32.mxu0 %vm1540_vm1, %v1541_v4 }
  0xdf   :  { %v1298_v24 = vpop.f32.mrb[0].mxu0 }
  0xe0   :  { %v1668_v25 = vadd.f32 %v1298_v24, %v1204_v23  ;;  %v133_v26 = vpop.f32.mrb[1].mxu0 }
  0xe1   :  { %v1670_v27 = vadd.f32 %v1204_v23, %v133_v26  ;;  %v259_v28 = vpop.f32.mrb[0].mxu1 }
  0xe2   :  { %v1318_v29 = vpop.f32.mrb[1].mxu1 }
  0xe3   :  { %v1301_v30 = vpop.f32.mrb[2].mxu0 }
  0xe4   :  { %v1672_v31 = vadd.f32 %v1301_v30, %v1204_v23  ;;  %v143_v32 = vpop.f32.mrb[3].mxu0 }
  0xe5   :  { %v1674_v33 = vadd.f32 %v1204_v23, %v143_v32 }
  0xe7   :  { %v1304_v34 = vpop.f32.mrb[4].mxu0 }
  0xe8   :  { %v1676_v35 = vadd.f32 %v1304_v34, %v1204_v23  ;;  %v153_v36 = vpop.f32.mrb[5].mxu0 }
  0xe9   :  { %v1678_v37 = vadd.f32 %v1204_v23, %v153_v36 }
  0xeb   :  { %v1307_v38 = vpop.f32.mrb[6].mxu0 }
  0xec   :  { %v169_v39 = vadd.f32 %v1307_v38, %v1204_v23  ;;  %v163_v40 = vpop.f32.mrb[7].mxu0 }
  0xed   :  { %v164_v41 = vadd.f32 %v1204_v23, %v163_v40 }
  0xee   :  { %v263_v42 = vadd.f32 %v259_v28, %v169_v39 }
  0xf0   :  { %1475 = vtanh.f32 %v263_v42  ;;  %v1214_v45 = vmul.f32 -1.442695, %v263_v42 }
  0xf2   :  { %1477 = vpow2.f32 %v1214_v45 }
  0xfa   :  { %v1476_v43 = vpop.eup %1475 }
  0xfb   :  { %277 = vrot.lane.b32.xlu0 %v1476_v43, %s1542_s0 }
  0xfc   :  { %v1478_v46 = vpop.eup %1477 }
  0xfd   :  { %v267_v47 = vadd.f32 1.0, %v1478_v46 }
  0xff   :  { %272 = vrot.lane.b32.xlu0 %v189_v44, %s1543_s3  ;;  %1479 = vrcp.f32 %v267_v47 }
 0x109   :  { %v1480_v48 = vpop.eup %1479 }
 0x16d   :  { %v278_v49 = vpop.permute.xlu0 %277 }
 0x16e   :  { %v280_v50 = vmul.f32 %v1480_v48, %v278_v49 }
 0x170   :  { %282 = vrot.lane.b32.xlu1 %v280_v50, %s1543_s3 }
 0x171   :  { %v273_v51 = vpop.permute.xlu0 %272 }
 0x172   :  { %v275_v52 = vmul.f32 %v1480_v48, %v273_v51 }
 0x1e2   :  { %v283_v53 = vpop.permute.xlu1 %282 }
 0x1e3   :  { %v285_v54 = vadd.f32 %v283_v53, %v275_v52 }
 0x1e5   :  { %1481 = vtanh.f32 %v285_v54 }
 0x1ef   :  { %v1482_v55 = vpop.eup %1481 }
 0x1f0   :  { %288 = vrot.lane.b32.xlu1 %v1482_v55, %s1542_s0 }
 0x1f4   :  { %298 = vrot.lane.b32.xlu1 %v285_v54, %s1544_s29 }
 0x262   :  { %v289_v56 = vpop.permute.xlu1 %288 }
 0x263   :  { %v291_v57 = vmul.f32 %v1480_v48, %v289_v56 }
 0x265   :  { %293 = vrot.lane.b32.xlu0 %v291_v57, %s1543_s3 }
 0x266   :  { %v299_v58 = vpop.permute.xlu1 %298 }
 0x267   :  { %301 = vst.msk [vmem:[#allocation4] sm:$0xff] %vm42_vm0, %v299_v58 }
 0x26e   :  { %v305_v59 = vld [vmem:[#allocation4] sm:$0xff] }
 0x26f   :  { %388 = vrot.lane.b32.xlu1 %v305_v59, %s1543_s3 }
 0x2d7   :  { %v294_v60 = vpop.permute.xlu0 %293 }
 0x2d8   :  { %296 = vst.msk [vmem:[#allocation3] sm:$0xff] %vm42_vm0, %v294_v60 }
 0x2df   :  { %v304_v61 = vld [vmem:[#allocation3] sm:$0xff] }
 0x2e0   :  { %1328 = vmatmul.mubr.msk.f32.vlgmr.msra.gmra.mrb[2].mxu1 %vm42_vm0, %v304_v61 }
 0x2e1   :  { %1435 = vmatpush3.bf16.msra.mxu1 %v1609_v11  ;;  %1349 = vmatprep.mubr.msk.f32.mxu1 %vm1540_vm1, %v1541_v4  ;;  %v389_v10 = vpop.permute.xlu1 %388 }
 0x2e2   :  { %1436 = vmatprep.subr.bf16.mxu1 %v1539_v3 }
 0x2e5   :  { %1438 = vmatpush3.bf16.msra.mxu1 %v1618_v14 }
 0x2e6   :  { %1445 = vmatprep.subr.bf16.mxu1 %v1539_v3 }
 0x3b3   :  { %v375_v62 = vpop.f32.mrb[2].mxu1 }
 0x3b4   :  { %v379_v63 = vadd.f32 %v375_v62, %v164_v41  ;;  %v1329_v0 = vpop.f32.mrb[3].mxu1 }
 0x3b6   :  { %1483 = vtanh.f32 %v379_v63  ;;  %v1216_v2 = vmul.f32 -1.442695, %v379_v63 }
 0x3b8   :  { %1485 = vpow2.f32 %v1216_v2 }
 0x3c0   :  { %v1484_v1 = vpop.eup %1483 }
 0x3c1   :  { %393 = vrot.lane.b32.xlu0 %v1484_v1, %s1542_s0 }
 0x3c2   :  { %v1486_v5 = vpop.eup %1485 }
 0x3c3   :  { %v383_v6 = vadd.f32 1.0, %v1486_v5 }
 0x3c5   :  { %1487 = vrcp.f32 %v383_v6 }
 0x3cf   :  { %v1488_v7 = vpop.eup %1487 }
 0x3d0   :  { %v391_v12 = vmul.f32 %v1488_v7, %v389_v10 }
 0x433   :  { %v394_v8 = vpop.permute.xlu0 %393 }
 0x434   :  { %v396_v9 = vmul.f32 %v1488_v7, %v394_v8 }
 0x436   :  { %398 = vrot.lane.b32.xlu0 %v396_v9, %s1543_s3 }
 0x4a8   :  { %v399_v13 = vpop.permute.xlu0 %398 }
 0x4a9   :  { %v401_v15 = vadd.f32 %v399_v13, %v391_v12 }
 0x4ab   :  { %1489 = vtanh.f32 %v401_v15 }
 0x4b5   :  { %v1490_v16 = vpop.eup %1489 }
 0x4b6   :  { %404 = vrot.lane.b32.xlu1 %v1490_v16, %s1542_s0 }
 0x4ba   :  { %414 = vrot.lane.b32.xlu1 %v401_v15, %s1544_s29 }
 0x528   :  { %v405_v17 = vpop.permute.xlu1 %404 }
 0x529   :  { %v407_v18 = vmul.f32 %v1488_v7, %v405_v17 }
 0x52b   :  { %409 = vrot.lane.b32.xlu0 %v407_v18, %s1543_s3 }
 0x52c   :  { %v415_v19 = vpop.permute.xlu1 %414 }
 0x52d   :  { %417 = vst.msk [vmem:[#allocation4] sm:$0xff] %vm42_vm0, %v415_v19 }
 0x534   :  { %v421_v20 = vld [vmem:[#allocation4] sm:$0xff] }
 0x535   :  { %504 = vrot.lane.b32.xlu1 %v421_v20, %s1543_s3 }
 0x59d   :  { %v410_v21 = vpop.permute.xlu0 %409 }
 0x59e   :  { %412 = vst.msk [vmem:[#allocation3] sm:$0xff] %vm42_vm0, %v410_v21 }
 0x5a5   :  { %v420_v22 = vld [vmem:[#allocation3] sm:$0xff] }
 0x5a6   :  { %1339 = vmatmul.mubr.msk.f32.vlgmr.msra.gmra.mrb[8].mxu0 %vm42_vm0, %v420_v22 }
 0x5a7   :  { %1441 = vmatpush3.bf16.msra.mxu0 %v1609_v11  ;;  %1360 = vmatprep.mubr.msk.f32.mxu0 %vm1540_vm1, %v1541_v4  ;;  %v505_v39 = vpop.permute.xlu1 %504 }
 0x5a8   :  { %1442 = vmatprep.subr.bf16.mxu0 %v1539_v3 }
 0x5ab   :  { %1444 = vmatpush3.bf16.msra.mxu0 %v1618_v14 }
 0x5ac   :  { %1451 = vmatprep.subr.bf16.mxu0 %v1539_v3 }
 0x679   :  { %v491_v23 = vpop.f32.mrb[8].mxu0 }
 0x67a   :  { %v495_v24 = vadd.f32 %v491_v23, %v1676_v35  ;;  %v1340_v26 = vpop.f32.mrb[9].mxu0 }
 0x67c   :  { %1491 = vtanh.f32 %v495_v24  ;;  %v1218_v29 = vmul.f32 -1.442695, %v495_v24 }
 0x67e   :  { %1493 = vpow2.f32 %v1218_v29 }
 0x686   :  { %v1492_v28 = vpop.eup %1491 }
 0x687   :  { %509 = vrot.lane.b32.xlu0 %v1492_v28, %s1542_s0 }
 0x688   :  { %v1494_v30 = vpop.eup %1493 }
 0x689   :  { %v499_v32 = vadd.f32 1.0, %v1494_v30 }
 0x68b   :  { %1495 = vrcp.f32 %v499_v32 }
 0x695   :  { %v1496_v34 = vpop.eup %1495 }
 0x696   :  { %v507_v40 = vmul.f32 %v1496_v34, %v505_v39 }
 0x6f9   :  { %v510_v36 = vpop.permute.xlu0 %509 }
 0x6fa   :  { %v512_v38 = vmul.f32 %v1496_v34, %v510_v36 }
 0x6fc   :  { %514 = vrot.lane.b32.xlu0 %v512_v38, %s1543_s3 }
 0x76e   :  { %v515_v41 = vpop.permute.xlu0 %514 }
 0x76f   :  { %v517_v42 = vadd.f32 %v515_v41, %v507_v40 }
 0x771   :  { %1497 = vtanh.f32 %v517_v42 }
 0x77b   :  { %v1498_v35 = vpop.eup %1497 }
 0x77c   :  { %520 = vrot.lane.b32.xlu1 %v1498_v35, %s1542_s0 }
 0x780   :  { %530 = vrot.lane.b32.xlu1 %v517_v42, %s1544_s29 }
 0x7ee   :  { %v521_v43 = vpop.permute.xlu1 %520 }
 0x7ef   :  { %v523_v44 = vmul.f32 %v1496_v34, %v521_v43 }
 0x7f1   :  { %525 = vrot.lane.b32.xlu0 %v523_v44, %s1543_s3 }
 0x7f2   :  { %v531_v45 = vpop.permute.xlu1 %530 }
 0x7f3   :  { %533 = vst.msk [vmem:[#allocation4] sm:$0xff] %vm42_vm0, %v531_v45 }
 0x7fa   :  { %v537_v46 = vld [vmem:[#allocation4] sm:$0xff] }
 0x7fb   :  { %620 = vrot.lane.b32.xlu1 %v537_v46, %s1543_s3 }
 0x863   :  { %v526_v47 = vpop.permute.xlu0 %525 }
 0x864   :  { %528 = vst.msk [vmem:[#allocation3] sm:$0xff] %vm42_vm0, %v526_v47 }
 0x86b   :  { %v536_v48 = vld [vmem:[#allocation3] sm:$0xff] }
 0x86c   :  { %1350 = vmatmul.mubr.msk.f32.vlgmr.msra.gmra.mrb[4].mxu1 %vm42_vm0, %v536_v48 }
 0x86d   :  { %1447 = vmatpush3.bf16.msra.mxu1 %v1609_v11  ;;  %1371 = vmatprep.mubr.msk.f32.mxu1 %vm1540_vm1, %v1541_v4  ;;  %v621_v59 = vpop.permute.xlu1 %620 }
 0x86e   :  { %1448 = vmatprep.subr.bf16.mxu1 %v1539_v3 }
 0x871   :  { %1450 = vmatpush3.bf16.msra.mxu1 %v1618_v14 }
 0x872   :  { %1457 = vmatprep.subr.bf16.mxu1 %v1539_v3 }
 0x93f   :  { %v607_v49 = vpop.f32.mrb[4].mxu1 }
 0x940   :  { %v611_v50 = vadd.f32 %v607_v49, %v1678_v37  ;;  %v1351_v51 = vpop.f32.mrb[5].mxu1 }
 0x942   :  { %1499 = vtanh.f32 %v611_v50  ;;  %v1220_v53 = vmul.f32 -1.442695, %v611_v50 }
 0x944   :  { %1501 = vpow2.f32 %v1220_v53 }
 0x94c   :  { %v1500_v52 = vpop.eup %1499 }
 0x94d   :  { %625 = vrot.lane.b32.xlu0 %v1500_v52, %s1542_s0 }
 0x94e   :  { %v1502_v54 = vpop.eup %1501 }
 0x94f   :  { %v615_v55 = vadd.f32 1.0, %v1502_v54 }
 0x951   :  { %1503 = vrcp.f32 %v615_v55 }
 0x95b   :  { %v1504_v56 = vpop.eup %1503 }
 0x95c   :  { %v623_v60 = vmul.f32 %v1504_v56, %v621_v59 }
 0x9bf   :  { %v626_v57 = vpop.permute.xlu0 %625 }
 0x9c0   :  { %v628_v58 = vmul.f32 %v1504_v56, %v626_v57 }
 0x9c2   :  { %630 = vrot.lane.b32.xlu0 %v628_v58, %s1543_s3 }
 0xa34   :  { %v631_v61 = vpop.permute.xlu0 %630 }
 0xa35   :  { %v633_v62 = vadd.f32 %v631_v61, %v623_v60 }
 0xa37   :  { %1505 = vtanh.f32 %v633_v62 }
 0xa41   :  { %v1506_v37 = vpop.eup %1505 }
 0xa42   :  { %636 = vrot.lane.b32.xlu1 %v1506_v37, %s1542_s0 }
 0xa46   :  { %646 = vrot.lane.b32.xlu1 %v633_v62, %s1544_s29 }
 0xab4   :  { %v637_v63 = vpop.permute.xlu1 %636 }
 0xab5   :  { %v639_v0 = vmul.f32 %v1504_v56, %v637_v63 }
 0xab7   :  { %641 = vrot.lane.b32.xlu0 %v639_v0, %s1543_s3 }
 0xab8   :  { %v647_v1 = vpop.permute.xlu1 %646 }
 0xab9   :  { %649 = vst.msk [vmem:[#allocation4] sm:$0xff] %vm42_vm0, %v647_v1 }
 0xac0   :  { %v653_v2 = vld [vmem:[#allocation4] sm:$0xff] }
 0xac1   :  { %736 = vrot.lane.b32.xlu1 %v653_v2, %s1543_s3 }
 0xb29   :  { %v642_v5 = vpop.permute.xlu0 %641 }
 0xb2a   :  { %644 = vst.msk [vmem:[#allocation3] sm:$0xff] %vm42_vm0, %v642_v5 }
 0xb31   :  { %v652_v6 = vld [vmem:[#allocation3] sm:$0xff] }
 0xb32   :  { %1361 = vmatmul.mubr.msk.f32.vlgmr.msra.gmra.mrb[10].mxu0 %vm42_vm0, %v652_v6 }
 0xb33   :  { %1453 = vmatpush3.bf16.msra.mxu0 %v1609_v11  ;;  %1382 = vmatprep.mubr.msk.f32.mxu0 %vm1540_vm1, %v1541_v4  ;;  %v737_v19 = vpop.permute.xlu1 %736 }
 0xb34   :  { %1454 = vmatprep.subr.bf16.mxu0 %v1539_v3 }
 0xb37   :  { %1456 = vmatpush3.bf16.msra.mxu0 %v1618_v14 }
 0xb38   :  { %1463 = vmatprep.subr.bf16.mxu0 %v1539_v3 }
 0xc05   :  { %v723_v7 = vpop.f32.mrb[10].mxu0 }
 0xc06   :  { %v727_v8 = vadd.f32 %v723_v7, %v1672_v31  ;;  %v1362_v9 = vpop.f32.mrb[11].mxu0 }
 0xc08   :  { %1507 = vtanh.f32 %v727_v8  ;;  %v1222_v12 = vmul.f32 -1.442695, %v727_v8 }
 0xc0a   :  { %1509 = vpow2.f32 %v1222_v12 }
 0xc12   :  { %v1508_v10 = vpop.eup %1507 }
 0xc13   :  { %741 = vrot.lane.b32.xlu0 %v1508_v10, %s1542_s0 }
 0xc14   :  { %v1510_v13 = vpop.eup %1509 }
 0xc15   :  { %v731_v15 = vadd.f32 1.0, %v1510_v13 }
 0xc17   :  { %1511 = vrcp.f32 %v731_v15 }
 0xc21   :  { %v1512_v16 = vpop.eup %1511 }
 0xc22   :  { %v739_v20 = vmul.f32 %v1512_v16, %v737_v19 }
 0xc85   :  { %v742_v17 = vpop.permute.xlu0 %741 }
 0xc86   :  { %v744_v18 = vmul.f32 %v1512_v16, %v742_v17 }
 0xc88   :  { %746 = vrot.lane.b32.xlu0 %v744_v18, %s1543_s3 }
 0xcfa   :  { %v747_v21 = vpop.permute.xlu0 %746 }
 0xcfb   :  { %v749_v22 = vadd.f32 %v747_v21, %v739_v20 }
 0xcfd   :  { %1513 = vtanh.f32 %v749_v22 }
 0xd07   :  { %v1514_v31 = vpop.eup %1513 }
 0xd08   :  { %752 = vrot.lane.b32.xlu1 %v1514_v31, %s1542_s0 }
 0xd0c   :  { %762 = vrot.lane.b32.xlu1 %v749_v22, %s1544_s29 }
 0xd7a   :  { %v753_v23 = vpop.permute.xlu1 %752 }
 0xd7b   :  { %v755_v24 = vmul.f32 %v1512_v16, %v753_v23  ;;  %v1114_v23 = vld [vmem:[%s1812_s4] sm:$0xff] }
 0xd7d   :  { %757 = vrot.lane.b32.xlu0 %v755_v24, %s1543_s3  ;;  %v1115_v24 = vld [vmem:[%s1812_s4 + $0x8] sm:$0xff] }
 0xd7e   :  { %v763_v26 = vpop.permute.xlu1 %762 }
 0xd7f   :  { %765 = vst.msk [vmem:[#allocation4] sm:$0xff] %vm42_vm0, %v763_v26  ;;  %v1464_v26 = vpack.c.bf16 %v1115_v24, %v1114_v23 }
 0xd86   :  { %v769_v28 = vld [vmem:[#allocation4] sm:$0xff] }
 0xd87   :  { %852 = vrot.lane.b32.xlu1 %v769_v28, %s1543_s3  ;;  %v1116_v28 = vld [vmem:[%s1812_s4 + $0x10] sm:$0xff] }
 0xdef   :  { %v758_v29 = vpop.permute.xlu0 %757 }
 0xdf0   :  { %760 = vst.msk [vmem:[#allocation3] sm:$0xff] %vm42_vm0, %v758_v29  ;;  %v1117_v29 = vld [vmem:[%s1812_s4 + $0x18] sm:$0xff] }
 0xdf7   :  { %v768_v30 = vld [vmem:[#allocation3] sm:$0xff] }
 0xdf8   :  { %1372 = vmatmul.mubr.msk.f32.vlgmr.msra.gmra.mrb[6].mxu1 %vm42_vm0, %v768_v30  ;;  %v1467_v30 = vpack.c.bf16 %v1117_v29, %v1116_v28 }
 0xdf9   :  { %1459 = vmatpush3.bf16.msra.mxu1 %v1609_v11  ;;  %1393 = vmatprep.mubr.msk.f32.mxu1 %vm1540_vm1, %v1541_v4  ;;  %v853_v43 = vpop.permute.xlu1 %852 }
 0xdfa   :  { %1460 = vmatprep.subr.bf16.mxu1 %v1539_v3 }
 0xdfd   :  { %1462 = vmatpush3.bf16.msra.mxu1 %v1618_v14 }
 0xecb   :  { %v839_v32 = vpop.f32.mrb[6].mxu1 }
 0xecc   :  { %v843_v34 = vadd.f32 %v839_v32, %v1674_v33  ;;  %v1373_v36 = vpop.f32.mrb[7].mxu1 }
 0xece   :  { %1515 = vtanh.f32 %v843_v34  ;;  %v1224_v39 = vmul.f32 -1.442695, %v843_v34 }
 0xed0   :  { %1517 = vpow2.f32 %v1224_v39 }
 0xed8   :  { %v1516_v38 = vpop.eup %1515 }
 0xed9   :  { %857 = vrot.lane.b32.xlu0 %v1516_v38, %s1542_s0 }
 0xeda   :  { %v1518_v40 = vpop.eup %1517 }
 0xedb   :  { %v847_v41 = vadd.f32 1.0, %v1518_v40  ;;  %v1229_v40 = vld [vmem:[%s1813_s5] ss:$0 sm:$0xff] }
 0xedd   :  { %1519 = vrcp.f32 %v847_v41 }
 0xee7   :  { %v1520_v11 = vpop.eup %1519 }
 0xee8   :  { %v855_v14 = vmul.f32 %v1520_v11, %v853_v43 }
 0xf4b   :  { %v858_v42 = vpop.permute.xlu0 %857 }
 0xf4c   :  { %v860_v35 = vmul.f32 %v1520_v11, %v858_v42 }
 0xf4e   :  { %862 = vrot.lane.b32.xlu0 %v860_v35, %s1543_s3 }
 0xfc0   :  { %v863_v44 = vpop.permute.xlu0 %862 }
 0xfc1   :  { %v865_v45 = vadd.f32 %v863_v44, %v855_v14 }
 0xfc3   :  { %1521 = vtanh.f32 %v865_v45 }
 0xfcd   :  { %v1522_v33 = vpop.eup %1521 }
 0xfce   :  { %868 = vrot.lane.b32.xlu1 %v1522_v33, %s1542_s0 }
 0xfd2   :  { %878 = vrot.lane.b32.xlu1 %v865_v45, %s1544_s29 }
0x1040   :  { %v869_v46 = vpop.permute.xlu1 %868 }
0x1041   :  { %v871_v47 = vmul.f32 %v1520_v11, %v869_v46 }
0x1043   :  { %873 = vrot.lane.b32.xlu0 %v871_v47, %s1543_s3 }
0x1044   :  { %v879_v48 = vpop.permute.xlu1 %878 }
0x1045   :  { %881 = vst.msk [vmem:[#allocation4] sm:$0xff] %vm42_vm0, %v879_v48 }
0x104c   :  { %v885_v49 = vld [vmem:[#allocation4] sm:$0xff] }
0x104d   :  { %968 = vrot.lane.b32.xlu1 %v885_v49, %s1543_s3 }
0x10b5   :  { %v874_v50 = vpop.permute.xlu0 %873 }
0x10b6   :  { %876 = vst.msk [vmem:[#allocation3] sm:$0xff] %vm42_vm0, %v874_v50 }
0x10bd   :  { %v884_v51 = vld [vmem:[#allocation3] sm:$0xff] }
0x10be   :  { %1383 = vmatmul.mubr.msk.f32.vlgmr.msra.gmra.mrb[12].mxu0 %vm42_vm0, %v884_v51 }
0x10bf   :  { %1404 = vmatprep.mubr.msk.f32.mxu0 %vm1540_vm1, %v1541_v4  ;;  %v969_v62 = vpop.permute.xlu1 %968  ;;  %1465 = vmatpush3.bf16.msra.mxu0 %v1464_v26 }
0x10c0   :  { %1466 = vmatprep.subr.bf16.mxu0 %v1539_v3 }
0x10c3   :  { %1468 = vmatpush3.bf16.msra.mxu0 %v1467_v30 }
0x1191   :  { %v955_v52 = vpop.f32.mrb[12].mxu0 }
0x1192   :  { %v959_v53 = vadd.f32 %v955_v52, %v1668_v25  ;;  %v1384_v54 = vpop.f32.mrb[13].mxu0 }
0x1194   :  { %1523 = vtanh.f32 %v959_v53  ;;  %v1226_v56 = vmul.f32 -1.442695, %v959_v53 }
0x1196   :  { %1525 = vpow2.f32 %v1226_v56 }
0x119e   :  { %v1524_v55 = vpop.eup %1523 }
0x119f   :  { %973 = vrot.lane.b32.xlu0 %v1524_v55, %s1542_s0 }
0x11a0   :  { %v1526_v57 = vpop.eup %1525 }
0x11a1   :  { %v963_v58 = vadd.f32 1.0, %v1526_v57 }
0x11a3   :  { %1527 = vrcp.f32 %v963_v58 }
0x11ad   :  { %v1528_v59 = vpop.eup %1527 }
0x11ae   :  { %v971_v4 = vmul.f32 %v1528_v59, %v969_v62 }
0x1211   :  { %v974_v60 = vpop.permute.xlu0 %973 }
0x1212   :  { %v976_v61 = vmul.f32 %v1528_v59, %v974_v60 }
0x1214   :  { %978 = vrot.lane.b32.xlu0 %v976_v61, %s1543_s3 }
0x1286   :  { %v979_v37 = vpop.permute.xlu0 %978 }
0x1287   :  { %v981_v63 = vadd.f32 %v979_v37, %v971_v4 }
0x1289   :  { %1529 = vtanh.f32 %v981_v63 }
0x1293   :  { %v1530_v25 = vpop.eup %1529 }
0x1294   :  { %984 = vrot.lane.b32.xlu1 %v1530_v25, %s1542_s0 }
0x1298   :  { %994 = vrot.lane.b32.xlu1 %v981_v63, %s1544_s29 }
0x1306   :  { %v985_v0 = vpop.permute.xlu1 %984 }
0x1307   :  { %v987_v1 = vmul.f32 %v1528_v59, %v985_v0 }
0x1309   :  { %989 = vrot.lane.b32.xlu0 %v987_v1, %s1543_s3 }
0x130a   :  { %v995_v2 = vpop.permute.xlu1 %994 }
0x130b   :  { %997 = vst.msk [vmem:[#allocation4] sm:$0xff] %vm42_vm0, %v995_v2 }
0x1312   :  { %v1000_v5 = vld [vmem:[#allocation4] sm:$0xff] }
0x1313   :  { %1083 = vrot.lane.b32.xlu1 %v1000_v5, %s1543_s3 }
0x137b   :  { %v990_v6 = vpop.permute.xlu0 %989 }
0x137c   :  { %992 = vst.msk [vmem:[#allocation3] sm:$0xff] %vm42_vm0, %v990_v6 }
0x1383   :  { %v999_v7 = vld [vmem:[#allocation3] sm:$0xff] }
0x1384   :  { %1394 = vmatmul.mubr.msk.f32.vlgmr.msra.gmra.mrb[8].mxu1 %vm42_vm0, %v999_v7 }
0x1385   :  { %v1084_v20 = vpop.permute.xlu1 %1083 }
0x1457   :  { %v1070_v8 = vpop.f32.mrb[8].mxu1 }
0x1458   :  { %v1074_v9 = vadd.f32 %v1070_v8, %v1670_v27  ;;  %v1395_v10 = vpop.f32.mrb[9].mxu1 }
0x145a   :  { %1531 = vtanh.f32 %v1074_v9  ;;  %v1228_v13 = vmul.f32 -1.442695, %v1074_v9 }
0x145c   :  { %1533 = vpow2.f32 %v1228_v13 }
0x1464   :  { %v1532_v12 = vpop.eup %1531 }
0x1465   :  { %1088 = vrot.lane.b32.xlu0 %v1532_v12, %s1542_s0 }
0x1466   :  { %v1534_v15 = vpop.eup %1533 }
0x1467   :  { %v1078_v16 = vadd.f32 1.0, %v1534_v15 }
0x1469   :  { %1535 = vrcp.f32 %v1078_v16 }
0x1473   :  { %v1536_v17 = vpop.eup %1535 }
0x1474   :  { %v1086_v21 = vmul.f32 %v1536_v17, %v1084_v20 }
0x14d7   :  { %v1089_v18 = vpop.permute.xlu0 %1088 }
0x14d8   :  { %v1091_v19 = vmul.f32 %v1536_v17, %v1089_v18 }
0x14da   :  { %1093 = vrot.lane.b32.xlu0 %v1091_v19, %s1543_s3 }
0x154c   :  { %v1094_v22 = vpop.permute.xlu0 %1093 }
0x154d   :  { %v1096_v31 = vadd.f32 %v1094_v22, %v1086_v21 }
0x154f   :  { %1537 = vtanh.f32 %v1096_v31 }
0x1559   :  { %v1538_v27 = vpop.eup %1537 }
0x155a   :  { %1099 = vrot.lane.b32.xlu1 %v1538_v27, %s1542_s0 }
0x155e   :  { %1109 = vrot.lane.b32.xlu1 %v1096_v31, %s1544_s29 }
0x15cc   :  { %v1100_v32 = vpop.permute.xlu1 %1099 }
0x15cd   :  { %v1102_v34 = vmul.f32 %v1536_v17, %v1100_v32 }
0x15cf   :  { %1104 = vrot.lane.b32.xlu0 %v1102_v34, %s1543_s3 }
0x15d0   :  { %v1110_v36 = vpop.permute.xlu1 %1109 }
0x15d1   :  { %1112 = vst.msk [vmem:[#allocation4] sm:$0xff] %vm42_vm0, %v1110_v36 }
0x1641   :  { %v1105_v38 = vpop.permute.xlu0 %1104 }
0x1642   :  { %1107 = vst.msk [vmem:[#allocation3] sm:$0xff] %vm42_vm0, %v1105_v38 }
0x1649   :  { %v1113_v39 = vld [vmem:[#allocation3] sm:$0xff] }
0x164a   :  { %1405 = vmatmul.mubr.msk.f32.vlgmr.msra.gmra.mrb[14].mxu0 %vm42_vm0, %v1113_v39 }
0x171d   :  { %v1194_v41 = vpop.f32.mrb[14].mxu0 }
0x171e   :  { %v1195_v3 = vadd.f32 %v1229_v40, %v1194_v41  ;;  %v1406_v11 = vpop.f32.mrb[15].mxu0 }
0x1720   :  { %1199 = vst.msk [vmem:[%s1814_s6] sm:$0xff] %vm1198_vm2, %v1195_v3 }

</bundles_post_ra>
